<compile_context>
chip_gen: v7x
topology: tpu7x:2x2x1
jax: 0.10.0
libtpu: 0.0.40
codegen_flags: <defaults>
</compile_context>

<pallas_src>
from functools import partial

import jax
import jax.numpy as jnp
import numpy as np
from jax.experimental import pallas as pl
from jax.experimental.pallas import tpu as pltpu


# ----------------------------- Pallas kernel -------------------------------

def _layernorm2d_kernel(x_ref, w_ref, b_ref, o_ref, *, eps, inv_c):
    # x_ref block: (1, C, TN); w_ref / b_ref: (C, 1)
    x = x_ref[0].astype(jnp.float32)                     # (C, TN)
    # Single-pass moments over the channel (sublane) axis.
    sx = jnp.sum(x, axis=0, keepdims=True)               # (1, TN)
    sxx = jnp.sum(x * x, axis=0, keepdims=True)          # (1, TN)
    u = sx * inv_c                                       # E[x]
    var = jnp.maximum(sxx * inv_c - u * u, 0.0)          # E[x^2]-u^2, clamp >=0
    inv = jax.lax.rsqrt(var + eps)                       # EUP (vrsqrt), not VPU div
    y = (x - u) * inv                                    # normalize
    o_ref[0] = (w_ref[...] * y + b_ref[...]).astype(o_ref.dtype)


# --------------------------- tile-size selection ----------------------------

def _pick_spatial_tile(hw, c, itemsize):
    """Largest multiple-of-128 divisor of hw under a ~2 MiB block budget."""
    if hw % 128 != 0:
        # Full-extent block (block == full dim is always legal).  Trailing
        # lanes produce masked stores; acceptable for cold shapes.
        # TODO(synk): pad H*W to a multiple of 128 in the wrapper if a
        # non-128-divisible spatial extent ever becomes hot.
        return hw
    target_block_bytes = 2 << 20                       # ~2 MiB per (1,C,TN) block
    cap = (target_block_bytes // max(1, c * itemsize)) // 128 * 128
    # Lane-run floor: each HBM strided run is TN*itemsize bytes; keep >= ~2 KiB
    # (512 lanes for f32, 1024 for bf16) so strided-DMA overhead stays small.
    tn_floor = ((2048 // itemsize) + 127) // 128 * 128
    cap = max(cap, tn_floor)
    cap = min(cap, hw)
    best = 128
    for tn in range(128, cap + 1, 128):
        if hw % tn == 0:
            best = tn
    return best


def _ensure_megacore(tn, hw, batch):
    """Make sure the grid has >= 2 steps so both v7x TensorCores get work."""
    if batch * (hw // tn) >= 2:
        return tn
    if tn % 256 == 0 and hw % (tn // 2) == 0:
        return tn // 2
    return tn


# ------------------------------- wrapper ------------------------------------

def layernorm2d(x, weight, bias, eps=1e-6):
    """x: (B, C, H, W) NCHW; weight, bias: (C,).  Returns (B, C, H, W)."""
    B, C, H, W = x.shape
    hw = H * W
    itemsize = jnp.dtype(x.dtype).itemsize

    tn = _pick_spatial_tile(hw, C, itemsize)
    tn = _ensure_megacore(tn, hw, B)

    x3 = x.reshape(B, C, hw)                             # free contiguous reshape
    w2 = weight.reshape(C, 1).astype(jnp.float32)
    b2 = bias.reshape(C, 1).astype(jnp.float32)

    # VMEM budget: 2x double-buffered input + 2x output blocks plus in-kernel
    # f32 temporaries (~3 (C,TN) f32 copies), with 1 MiB slack.  Cap so we
    # stay comfortably under v7x's 64 MiB physical VMEM.
    block_bytes = C * tn * itemsize
    vmem_est = 4 * block_bytes + 3 * C * tn * 4 + (1 << 20)
    vmem_limit = int(min(max(vmem_est, 16 << 20), 48 << 20))

    cost = pl.CostEstimate(
        flops=8 * B * C * hw,                            # sq, 2 sums, sub, 2 mul, affine
        transcendentals=B * hw,                          # one rsqrt per spatial position
        bytes_accessed=2 * B * C * hw * itemsize + 2 * C * 4,
    )

    out = pl.pallas_call(
        partial(_layernorm2d_kernel, eps=eps, inv_c=1.0 / C),
        out_shape=jax.ShapeDtypeStruct((B, C, hw), x.dtype),
        grid=(B, hw // tn),
        in_specs=[
            pl.BlockSpec((1, C, tn), lambda b, t: (b, 0, t)),
            pl.BlockSpec((C, 1), lambda b, t: (0, 0)),
            pl.BlockSpec((C, 1), lambda b, t: (0, 0)),
        ],
        out_specs=pl.BlockSpec((1, C, tn), lambda b, t: (b, 0, t)),
        compiler_params=pltpu.CompilerParams(
            dimension_semantics=("parallel", "parallel"),
            vmem_limit_bytes=vmem_limit),
        cost_estimate=cost,
    )(x3, w2, b2)
    return out.reshape(B, C, H, W)


# ------------------------------ JAX reference -------------------------------

def layernorm2d_reference(x, weight, bias, eps=1e-6):
    """Pure-JAX mirror of the torch forward (mean/var over dim=1, biased var)."""
    u = jnp.mean(x, axis=1, keepdims=True)
    s = jnp.mean((x - u) ** 2, axis=1, keepdims=True)
    xn = (x - u) / jnp.sqrt(s + eps)
    return weight[None, :, None, None] * xn + bias[None, :, None, None]


# ------------------------------- main ---------------------------------------

if __name__ == "__main__":
    B, C, H, W = 2, 4, 16, 16

    key = jax.random.PRNGKey(0)
    kx, kw, kb = jax.random.split(key, 3)

    x = jax.random.normal(kx, (B, C, H, W), dtype=jnp.float32)
    # Module inits weight=ones, bias=zeros; perturb deterministically so the
    # affine path is actually exercised.
    weight = 1.0 + 0.1 * jax.random.normal(kw, (C,), jnp.float32)
    bias = 0.1 * jax.random.normal(kb, (C,), jnp.float32)

    out = layernorm2d(x, weight, bias)
    out = jax.block_until_ready(out)

    ref = layernorm2d_reference(x, weight, bias)
    np.testing.assert_allclose(np.asarray(out), np.asarray(ref),
                               rtol=1e-5, atol=1e-5)

    print("KERNEL_OK")
</pallas_src>

<mosaic_0001>
module attributes {stable_mosaic.version = 11 : i64} {
  func.func @_layernorm2d_kernel(%arg0: i32, %arg1: i32, %arg2: memref<1x4x256xf32, #tpu.memory_space<vmem>>, %arg3: memref<4x1xf32, #tpu.memory_space<vmem>>, %arg4: memref<4x1xf32, #tpu.memory_space<vmem>>, %arg5: memref<1x4x256xf32, #tpu.memory_space<vmem>>) attributes {dimension_semantics = [#tpu.dimension_semantics<parallel>, #tpu.dimension_semantics<parallel>], iteration_bounds = array<i64: 2, 1>, scalar_prefetch = 0 : i64, scratch_operands = 0 : i64, tpu.core_type = #tpu.core_type<tc>, window_params = [{transform_indices = @transform_0, window_bounds = array<i64: 1, 4, 256>}, {pipeline_mode = #tpu.pipeline_mode<synchronous>, transform_indices = @transform_1, window_bounds = array<i64: 4, 1>}, {pipeline_mode = #tpu.pipeline_mode<synchronous>, transform_indices = @transform_2, window_bounds = array<i64: 4, 1>}, {transform_indices = @transform_3, window_bounds = array<i64: 1, 4, 256>}]} {
    %c0 = arith.constant 0 : index
    %c0_0 = arith.constant 0 : index
    %c0_1 = arith.constant 0 : index
    %0 = vector.load %arg2[%c0, %c0_0, %c0_1] : memref<1x4x256xf32, #tpu.memory_space<vmem>>, vector<1x4x256xf32>
    %1 = vector.shape_cast %0 : vector<1x4x256xf32> to vector<4x256xf32>
    %cst = arith.constant dense<0.000000e+00> : vector<256xf32>
    %2 = vector.multi_reduction <add>, %1, %cst [0] : vector<4x256xf32> to vector<256xf32>
    %3 = vector.shape_cast %2 : vector<256xf32> to vector<1x256xf32>
    %4 = arith.mulf %1, %1 : vector<4x256xf32>
    %cst_2 = arith.constant dense<0.000000e+00> : vector<256xf32>
    %5 = vector.multi_reduction <add>, %4, %cst_2 [0] : vector<4x256xf32> to vector<256xf32>
    %6 = vector.shape_cast %5 : vector<256xf32> to vector<1x256xf32>
    %cst_3 = arith.constant 2.500000e-01 : f32
    %7 = vector.broadcast %cst_3 : f32 to vector<1x256xf32>
    %8 = arith.mulf %3, %7 : vector<1x256xf32>
    %cst_4 = arith.constant 2.500000e-01 : f32
    %9 = vector.broadcast %cst_4 : f32 to vector<1x256xf32>
    %10 = arith.mulf %6, %9 : vector<1x256xf32>
    %11 = arith.mulf %8, %8 : vector<1x256xf32>
    %12 = arith.subf %10, %11 : vector<1x256xf32>
    %cst_5 = arith.constant 0.000000e+00 : f32
    %13 = vector.broadcast %cst_5 : f32 to vector<1x256xf32>
    %14 = arith.maximumf %12, %13 : vector<1x256xf32>
    %cst_6 = arith.constant 9.99999997E-7 : f32
    %15 = vector.broadcast %cst_6 : f32 to vector<1x256xf32>
    %16 = arith.addf %14, %15 : vector<1x256xf32>
    %17 = math.rsqrt %16 : vector<1x256xf32>
    %18 = vector.broadcast %8 : vector<1x256xf32> to vector<4x256xf32>
    %19 = arith.subf %1, %18 : vector<4x256xf32>
    %20 = vector.broadcast %17 : vector<1x256xf32> to vector<4x256xf32>
    %21 = arith.mulf %19, %20 : vector<4x256xf32>
    %c0_7 = arith.constant 0 : index
    %c0_8 = arith.constant 0 : index
    %22 = vector.load %arg3[%c0_7, %c0_8] : memref<4x1xf32, #tpu.memory_space<vmem>>, vector<4x1xf32>
    %23 = vector.broadcast %22 : vector<4x1xf32> to vector<4x256xf32>
    %24 = arith.mulf %23, %21 : vector<4x256xf32>
    %c0_9 = arith.constant 0 : index
    %c0_10 = arith.constant 0 : index
    %25 = vector.load %arg4[%c0_9, %c0_10] : memref<4x1xf32, #tpu.memory_space<vmem>>, vector<4x1xf32>
    %26 = vector.broadcast %25 : vector<4x1xf32> to vector<4x256xf32>
    %27 = arith.addf %24, %26 : vector<4x256xf32>
    %c0_11 = arith.constant 0 : index
    %c0_12 = arith.constant 0 : index
    %c0_13 = arith.constant 0 : index
    %28 = vector.load %arg5[%c0_11, %c0_12, %c0_13] : memref<1x4x256xf32, #tpu.memory_space<vmem>>, vector<1x4x256xf32>
    %29 = vector.shape_cast %28 : vector<1x4x256xf32> to vector<4x256xf32>
    %30 = vector.shape_cast %27 : vector<4x256xf32> to vector<1x4x256xf32>
    tpu.vector_store %arg5[%c0_11, %c0_12, %c0_13], %30 {strides = array<i32>} : memref<1x4x256xf32, #tpu.memory_space<vmem>>, vector<1x4x256xf32>,
    return
  }
  func.func @transform_0(%arg0: i32, %arg1: i32) -> (i32, i32, i32) {
    %c0_i32 = arith.constant 0 : i32
    %c0_i32_0 = arith.constant 0 : i32
    return %arg0, %c0_i32, %arg1 : i32, i32, i32
  }
  func.func @transform_1(%arg0: i32, %arg1: i32) -> (i32, i32) {
    %c0_i32 = arith.constant 0 : i32
    %c0_i32_0 = arith.constant 0 : i32
    %c0_i32_1 = arith.constant 0 : i32
    return %c0_i32, %c0_i32_0 : i32, i32
  }
  func.func @transform_2(%arg0: i32, %arg1: i32) -> (i32, i32) {
    %c0_i32 = arith.constant 0 : i32
    %c0_i32_0 = arith.constant 0 : i32
    %c0_i32_1 = arith.constant 0 : i32
    return %c0_i32, %c0_i32_0 : i32, i32
  }
  func.func @transform_3(%arg0: i32, %arg1: i32) -> (i32, i32, i32) {
    %c0_i32 = arith.constant 0 : i32
    %c0_i32_0 = arith.constant 0 : i32
    return %arg0, %c0_i32, %arg1 : i32, i32, i32
  }
}

</mosaic_0001>

<bundles_post_ra>
// kernel: tpu_custom_call.1
= control target key start
LH: loop header
LB: loop body
LE: loop exit
PB: predicated region body
PF: predicated region fallthrough
CT: control target
= control target key end

     0   :  { %8 = vsyncpa [#allocation3], 0  ;;  %s798_s0 = inlined_call_operand.hbm [shape: f32[2,4,256], index: 0, kind: input, shape index: {}]   ;;  %s799_s1 = inlined_call_operand.vmem [shape: f32[4,1], index: 1, kind: input, shape index: {}]   ;;  %s800_s2 = inlined_call_operand.vmem [shape: f32[4,1], index: 2, kind: input, shape index: {}]   ;;  %s801_s3 = inlined_call_operand.hbm [shape: f32[2,4,256], index: 3, kind: output, shape index: {}]  }
   0x1   :  { %10 = vsyncpa [#allocation3 + $0x1], 0 }
   0x2   :  { %11 = vsyncpa [#allocation4], 0 }
   0x3   :  { %13 = vsyncpa [#allocation4 + $0x1], 0  ;;  %s616_s12 = smov 0   ;;  %s618_s13 = smov 0  }
   0x4   :  { %s620_s14 = smov 0   ;;  %s622_s15 = smov 0  }
   0x5   :  { %s624_s16 = smov 0   ;;  %s626_s17 = smov 0  }
   0x6 LB: > { %s393_s18 = sadd.s32 4294967295, %s591_s17   ;;  %s394_s19 = sadd.s32 4294967294, %s591_s17   ;;  %s591_s17 = sphi %s626_s17, %s19_s17   ;;  %s587_s16 = sphi %s624_s16, %s817_s16   ;;  %s583_s15 = sphi %s622_s15, %s816_s15   ;;  %s579_s14 = sphi %s620_s14, %s815_s14   ;;  %s575_s13 = sphi %s618_s13, %s814_s13   ;;  %s571_s12 = sphi %s616_s12, %s813_s12  }
   0x7   : > { %s31_s20 = sadd.s32 1, %s587_s16  ;;  %s40_s21 = sadd.s32 1, %s579_s14 }
   0x8   : > { %p33_p0 = scmp.ge.s32.totalorder %s31_s20, 2  ;;  %p47_p1 = scmp.ne.s32.totalorder %s579_s14, %s575_s13 }
   0x9   : > { %p48_p2 = scmp.eq.s32.totalorder %s591_s17, 0  ;;  %p53_p3 = scmp.ne.s32.totalorder %s575_s13, %s571_s12 }
   0xa   : > { %s819_s20 = smov (%p33_p0, %s31_s20), 0  ;;  %p54_p5 = scmp.eq.s32.totalorder %s393_s18, 0 }
   0xb   : > { %p657_p4 = por %p48_p2, %p47_p1  ;;  %s35_s23 = ssub.s32 %s587_s16, %s819_s20 }
   0xc   : > { %p121_p6 = scmp.eq.s32.totalorder %s393_s18, 1  ;;  %p38_p7 = scmp.eq.s32.totalorder %s35_s23, 0 }
   0xd   : > { %p663_p8 = por %p54_p5, %p53_p3  ;;  %p127_p10 = scmp.eq.s32.totalorder %s394_s19, 1 }
   0xe   : > { %p667_p9 = por %p121_p6, %p47_p1  ;;  %p422_p13 = scmp.lt.s32.totalorder %s591_s17, 2 }
   0xf   : > { %s672_s26 = scalar_select %p38_p7, %s579_s14, %s40_s21  }
  0x10   : > { %s805_s25 = scalar_select %p667_p9, 1, 0 }
  0x11   : > { %p674_p11 = por %p127_p10, %p53_p3  ;;  %s153_s28 = sand.u32 1, %s579_s14  }
  0x12   : > { %s397_s29 = sshll.u32 %s153_s28, 3  ;;  %s408_s30 = sshll.u32 %s587_s16, 7 }
  0x13   : > { %s806_s27 = scalar_select %p674_p11, 1, 0 }
  0x14   : > { %s685_s6 = scalar_lea.hbm %s798_s0, %s408_s30  ;;  %s157_s7 = scalar_lea.vmem [#allocation2], %s397_s29 }
  0x15   : > { %s167_s8 = sshll.u32 %s157_s7, 4  ;;  %p691_p0 = pnand %p422_p13, %p657_p4  ;;  %s687_s8 = int_to_ptr.vmem [resolvable:$true] %s167_s8 }
  0x16   : > { %s154_s10 = scalar_lea.sflag [#allocation3], %s153_s28  ;;  %s479_s11 = scalar_lea.hbm %s685_s6, 128 }
  0x17   : > { %p480_p3 = scmp.ne.s32.totalorder %s685_s6, %s479_s11  ;;  %p481_p5 = pneg %p691_p0 }
  0x18   : > { %s484_s21 = scalar_lea.hbm %s798_s0, 256  ;;  %p485_p4 = scmp.lt.u32.totalorder %s685_s6, %s798_s0 }
  0x19   : > { %p482_p6 = pnand %p481_p5, %p480_p3  ;;  %p486_p10 = scmp.lt.u32.totalorder %s484_s21, %s479_s11 }
  0x1a   : > { %p488_p12 = scmp.lt.u32.totalorder %s479_s11, %s685_s6 }
  0x1b   : > { %p483_p7 = pneg %p482_p6  ;;  %p487_p13 = por %p486_p10, %p485_p4 }
  0x1d   : > { %p489_p1 = por %p488_p12, %p487_p13 }
  0x1f   : > { %p490_p2 = pnand %p489_p1, %p483_p7 }
  0x21   : > { %493 = shalt.err (!%p490_p2)
}
  0x22   : > { %s494_s28 = scalar_lea.vmem %s687_s8, 128  ;;  %s593_s29 = smov [#allocation2]  }
  0x23   : > { %p495_p3 = scmp.ne.s32.totalorder %s687_s8, %s494_s28  ;;  %s499_s30 = sshll.u32 %s593_s29, 4  ;;  %s500_s30 = int_to_ptr.vmem [resolvable:$false] %s499_s30 }
  0x24   : > { %s501_s4 = scalar_lea.vmem %s500_s30, 256  ;;  %p502_p9 = scmp.lt.s32.totalorder %s687_s8, %s500_s30 }
  0x25   : > { %p497_p6 = pnand %p495_p3, %p481_p5  ;;  %p503_p4 = scmp.lt.s32.totalorder %s501_s4, %s494_s28 }
  0x27   : > { %p498_p11 = pneg %p497_p6  ;;  %p504_p10 = por %p503_p4, %p502_p9 }
  0x29   : > { %p505_p12 = pnand %p504_p10, %p498_p11 }
  0x2b   : > { %508 = shalt.err (!%p505_p12)
}
  0x2c   : > { %417 = dma.hbm_to_vmem [thread:$0]  (!%p691_p0), %s685_s6, 128, %s687_s8, %s154_s10  }
  0x2d   : > { %p808_p1 = scmp.lt.s32.totalorder %s591_s17, 3  ;;  %p809_p2 = scmp.ge.s32.totalorder %s591_s17, 1 }
  0x2f   : > { %p173_p5 = pnand %p809_p2, %p808_p1 }
  0x30   : > { %s727_s5 = sand.u32 (!%p173_p5), 1, %s575_s13  }
  0x31   : > { %176 = sbr.rel (%p173_p5) target bundleno = 209 (0xd1), region = 32  ;;  %s401_s7 = sshll.u32 (!%p173_p5), %s727_s5, 3 }
  0x32   : > { %s179_s11 = scalar_lea.sflag (!%p173_p5), [#allocation3], %s727_s5  ;;  %s182_s9 = scalar_lea.vmem (!%p173_p5), [#allocation2], %s401_s7 }
  0x38   : > { %562 = dma.done.wait (%p663_p8), %s179_s11, 128  }
  0x39   : > { %564 = vsyncadd (%p663_p8), %s179_s11, 4294967168  ;;  %v594_v0 = vmov 0   ;;  %v268_v1 = vld [vmem:[%s799_s1] sm:$0xf]  ;;  %vm211_vm0 = vcmask 1043456   ;;  %s409_s24 = sshll.u32 %s583_s15, 7 }
  0x3a   : > { %473 = vset.pattern.permute.xlu0 %v594_v0  ;;  %v279_v2 = vld [vmem:[%s800_s2] sm:$0xf]  ;;  %s204_s19 = scalar_lea.vmem [#allocation5], %s401_s7  ;;  %s749_s28 = scalar_lea.hbm %s801_s3, %s409_s24 }
  0x3b   : > { %271 = vperm.xlu0 %473, %v268_v1   ;;  %v207_v3 = vld [vmem:[%s182_s9] sm:$0xff]  ;;  %s309_s21 = sshll.u32 %s204_s19, 4  ;;  %s293_s29 = scalar_lea.sflag [#allocation4], %s727_s5  ;;  %s751_s21 = int_to_ptr.vmem [resolvable:$true] %s309_s21 }
  0x3c   : > { %v209_v4 = vcombine.high %v207_v3, %v207_v3  ;;  %v226_v5 = vmul.f32 %v207_v3, %v207_v3  ;;  %v212_v6 = vsel %vm211_vm0, %v207_v3, 0.0  ;;  %s509_s30 = scalar_lea.vmem %s751_s21, 128  ;;  %p810_p9 = scmp.ne.s32.totalorder %s805_s25, 0 }
  0x3d   : > { %v213_v9 = vrot.slane %v212_v6, 4  ;;  %p510_p8 = scmp.ne.s32.totalorder %s751_s21, %s509_s30  ;;  %s595_s15 = smov [#allocation5]  }
  0x3e   : > { %v219_v7 = vsel %vm211_vm0, %v209_v4, 0.0  ;;  %v228_v8 = vcombine.high %v226_v5, %v226_v5  ;;  %v230_v11 = vsel %vm211_vm0, %v226_v5, 0.0  ;;  %s513_s4 = sshll.u32 %s595_s15, 4  ;;  %s514_s4 = int_to_ptr.vmem [resolvable:$false] %s513_s4 }
  0x3f   : > { %282 = vperm.xlu0 %473, %v279_v2   ;;  %v220_v10 = vrot.slane %v219_v7, 4  ;;  %v214_v13 = vadd.f32 %v213_v9, %v212_v6  ;;  %v231_v14 = vrot.slane %v230_v11, 4  ;;  %p511_p11 = pnand %p510_p8, %p810_p9  ;;  %s515_s7 = scalar_lea.vmem %s514_s4, 256 }
  0x40   : > { %v237_v12 = vsel %vm211_vm0, %v228_v8, 0.0  ;;  %p516_p7 = scmp.lt.s32.totalorder %s751_s21, %s514_s4  ;;  %p517_p13 = scmp.lt.s32.totalorder %s515_s7, %s509_s30 }
  0x41   : > { %v221_v15 = vadd.f32 %v220_v10, %v219_v7  ;;  %v238_v16 = vrot.slane %v237_v12, 4  ;;  %v215_v17 = vrot.slane %v214_v13, 2  ;;  %v232_v18 = vadd.f32 %v231_v14, %v230_v11  ;;  %p512_p0 = pneg %p511_p11 }
  0x42   : > { %p518_p3 = por %p517_p13, %p516_p7 }
  0x43   : > { %v222_v19 = vrot.slane %v221_v15, 2  ;;  %v239_v20 = vadd.f32 %v238_v16, %v237_v12  ;;  %v216_v21 = vadd.f32 %v215_v17, %v214_v13  ;;  %v233_v22 = vrot.slane %v232_v18, 2 }
  0x44   : > { %p519_p6 = pnand %p518_p3, %p512_p0 }
  0x45   : > { %v223_v23 = vadd.f32 %v222_v19, %v221_v15  ;;  %v240_v24 = vrot.slane %v239_v20, 2  ;;  %v217_v25 = vrot.slane %v216_v21, 1  ;;  %v234_v26 = vadd.f32 %v233_v22, %v232_v18 }
  0x47   : > { %v224_v27 = vrot.slane %v223_v23, 1  ;;  %v241_v28 = vadd.f32 %v240_v24, %v239_v20  ;;  %v218_v29 = vadd.f32 %v217_v25, %v216_v21  ;;  %v235_v30 = vrot.slane %v234_v26, 1 }
  0x49   : > { %v225_v31 = vadd.f32 %v224_v27, %v223_v23  ;;  %v242_v32 = vrot.slane %v241_v28, 1  ;;  %v236_v33 = vadd.f32 %v235_v30, %v234_v26  ;;  %v244_v34 = vmul.f32 0.25, %v218_v29 }
  0x4b   : > { %v243_v35 = vadd.f32 %v242_v32, %v241_v28  ;;  %v245_v36 = vmul.f32 0.25, %v225_v31  ;;  %v246_v37 = vmul.f32 0.25, %v236_v33  ;;  %v248_v38 = vmul.f32 %v244_v34, %v244_v34 }
  0x4d   : > { %v247_v39 = vmul.f32 0.25, %v243_v35  ;;  %v249_v40 = vmul.f32 %v245_v36, %v245_v36  ;;  %v250_v41 = vsub.f32 %v246_v37, %v248_v38  ;;  %v260_v48 = vcombine.low %v244_v34, %v245_v36 }
  0x4f   : > { %v251_v42 = vsub.f32 %v247_v39, %v249_v40  ;;  %v252_v43 = vmax.f32 %v250_v41, 0.0  ;;  %v262_v50 = vsub.f32 %v207_v3, %v260_v48 }
  0x51   : > { %v253_v44 = vmax.f32 %v251_v42, 0.0  ;;  %v254_v45 = vadd.f32 1e-06, %v252_v43 }
  0x53   : > { %v255_v46 = vadd.f32 1e-06, %v253_v44  ;;  %475 = vrsqrt.f32 %v254_v45 }
  0x55   : > { %477 = vrsqrt.f32 %v255_v46 }
  0x5d   : > { %v476_v47 = vpop.eup %475 }
  0x5f   : > { %v478_v49 = vpop.eup %477 }
  0x60   : > { %v265_v51 = vcombine.low %v476_v47, %v478_v49 }
  0x62   : > { %v267_v52 = vmul.f32 %v265_v51, %v262_v50 }
  0x64   : > { %v275_v53 = vcombine.high %v267_v52, %v267_v52 }
  0xba   : > { %v272_v54 = vpop.permute.xlu0 %271 }
  0xbb   : > { %v277_v55 = vmul.f32 %v272_v54, %v267_v52  ;;  %v278_v56 = vmul.f32 %v275_v53, %v272_v54 }
  0xbe   : > { %v283_v57 = vpop.permute.xlu0 %282 }
  0xbf   : > { %v285_v58 = vadd.f32 %v283_v57, %v277_v55  ;;  %v286_v59 = vadd.f32 %v283_v57, %v278_v56 }
  0xc1   : > { %v289_v60 = vcombine.low %v285_v58, %v286_v59 }
  0xc3   : > { %291 = vst [vmem:[%s204_s19] sm:$0xff] %v289_v60 }
  0xc4   : > { %522 = shalt.err (!%p519_p6)
}
  0xc5   : > { %s523_s5 = scalar_lea.hbm %s749_s28, 128  ;;  %s527_s6 = scalar_lea.hbm %s801_s3, 256 }
  0xc6   : > { %p524_p4 = scmp.ne.s32.totalorder %s749_s28, %s523_s5  ;;  %p528_p1 = scmp.lt.u32.totalorder %s749_s28, %s801_s3 }
  0xc7   : > { %p529_p2 = scmp.lt.u32.totalorder %s527_s6, %s523_s5  ;;  %p531_p8 = scmp.lt.u32.totalorder %s523_s5, %s749_s28 }
  0xc8   : > { %p525_p10 = pnand %p524_p4, %p810_p9 }
  0xc9   : > { %p530_p5 = por %p529_p2, %p528_p1 }
  0xca   : > { %p526_p12 = pneg %p525_p10 }
  0xcb   : > { %p532_p11 = por %p531_p8, %p530_p5 }
  0xcd   : > { %p533_p0 = pnand %p532_p11, %p526_p12 }
  0xcf   : > { %536 = shalt.err (!%p533_p0)
}
  0xd0   : > { %412 = dma.vmem_to_hbm [thread:$0]  (%p810_p9), %s751_s21, 128, %s749_s28, %s293_s29  }
  0xd1 PF: > { %s321_s18 = sand.u32 1, %s571_s12   ;;  %p811_p7 = scmp.ne.s32.totalorder %s806_s27, 0 }
  0xd2   : > { %p812_p13 = scmp.ge.s32.totalorder %s591_s17, 2  ;;  %s322_s24 = scalar_lea.sflag [#allocation4], %s321_s18 }
  0xd4   : > { %p419_p3 = pnand %p812_p13, %p811_p7 }
  0xd6   : > { %566 = dma.done.wait (!%p419_p3), %s322_s24, 128  }
  0xd7   : > { %568 = vsyncadd (!%p419_p3), %s322_s24, 4294967168  ;;  %s19_s17 = sadd.s32 1, %s591_s17   ;;  %s813_s12 = smov %s575_s13 }
  0xd8   : > { %p16_p6 = scmp.ge.s32.totalorder %s19_s17, 4   ;;  %s814_s13 = smov %s579_s14 }
  0xd9   : > { %s815_s14 = smov %s672_s26  ;;  %s816_s15 = smov %s587_s16 }
  0xda   : > { %s817_s16 = smov %s819_s20  ;;  %18 = sbr.rel (!%p16_p6) target bundleno = 6 (0x6), region = 77 }
  0xe1   :  { %327 = vsyncpa [#allocation3], 1 }
  0xe2   :  { %329 = vsyncpa [#allocation3 + $0x1], 1 }
  0xe3   :  { %330 = vsyncpa [#allocation4], 1 }
  0xe4   :  { %332 = vsyncpa [#allocation4 + $0x1], 1 }

</bundles_post_ra>
